<compile_context>
chip_gen: v6e
topology: v6e:2x2x1
jax: 0.10.0
libtpu: 0.0.40
codegen_flags: <defaults>
</compile_context>

<pallas_src>
import jax
import jax.numpy as jnp
from jax.experimental import pallas as pl
from jax.experimental.pallas import tpu as pltpu


def _affine_kernel(x_ref, o_ref):
    # ((x + 5) - 2) * 3 / 4  ==  (x + 3) * 0.75   (constant folded; 3 and 0.75
    # are exactly representable, differences vs the 4-op chain are <~1 ulp).
    x = x_ref[...]
    o_ref[...] = (x + jnp.asarray(3.0, x.dtype)) * jnp.asarray(0.75, x.dtype)


def _generation_tile_config():
    """(max_tile_bytes, vmem_limit_bytes or None) keyed off the TPU generation."""
    try:
        kind = jax.devices()[0].device_kind.lower()
    except Exception:
        kind = ""
    if "v7" in kind:
        # ~3.2 TB/s HBM per TC: larger tiles amortize the ~0.35 us/step cost.
        # 6 MiB in + 6 MiB out, double-buffered = 24 MiB; raise the scoped limit.
        return 6 * 1024 * 1024, 48 * 1024 * 1024
    if "v6" in kind:
        # 4 MiB tiles double-buffered (in+out) = 16 MiB < 32 MiB default.
        return 4 * 1024 * 1024, None
    # v5e (16 MiB scoped VMEM default) and anything unrecognized: conservative.
    return 2 * 1024 * 1024, None


def _choose_cols(n, sublane, max_cols):
    """Widest lane-dense cols (power-of-2 multiple of 128, <= max_cols) that
    divides n exactly, preferring rows that are a multiple of the sublane
    packing.  Returns None if n is not a multiple of 128."""
    # Pass 1: rows a multiple of the sublane packing (full tile fill).
    c = max_cols
    while c >= 128:
        if n % c == 0 and (n // c) % sublane == 0:
            return c
        c //= 2
    # Pass 2: at least one full sublane's worth of rows.
    c = max_cols
    while c >= 128:
        if n % c == 0 and (n // c) >= sublane:
            return c
        c //= 2
    # Pass 3: any exact lane-dense factorization (tiny tensors only).
    c = max_cols
    while c >= 128:
        if n % c == 0:
            return c
        c //= 2
    return None


def _choose_tile_rows(rows, cols, itemsize, sublane, max_tile_bytes):
    """Largest tile_rows that keeps one tile <= max_tile_bytes, is a multiple
    of the sublane packing, and divides rows exactly (no masked partial last
    block), preferring an even number of grid steps (v7x dual-TC balance)."""
    if rows * cols * itemsize <= max_tile_bytes:
        return rows  # single full-extent block
    cap = max(1, max_tile_bytes // (cols * itemsize))
    cap = min(cap, rows)
    exact = [d for d in range(sublane, cap + 1, sublane) if rows % d == 0]
    if exact:
        even = [d for d in exact if (rows // d) % 2 == 0]
        return max(even) if even else max(exact)
    # No exact divisor fits: aligned tile with a partial last block (rare).
    return max(sublane, (cap // sublane) * sublane)


def pt_module_forward(x, *, max_tile_bytes=None, max_cols=8192):
    """Applies ((x + 5) - 2) * 3 / 4 elementwise via a Pallas TPU kernel."""
    orig_shape = x.shape

    # PyTorch's div promotes integer inputs to floating point.
    if not jnp.issubdtype(x.dtype, jnp.floating):
        x = x.astype(jnp.float32)
    dtype = x.dtype

    n = x.size
    if n == 0:
        return x.reshape(orig_shape)

    itemsize = jnp.dtype(dtype).itemsize
    # Sublane packing factor: f32 -> 8, bf16 -> 16, int8/fp8 -> 32.
    sublane = max(8, 32 // itemsize)

    gen_tile_bytes, vmem_limit = _generation_tile_config()
    if max_tile_bytes is None:
        max_tile_bytes = gen_tile_bytes

    cols = _choose_cols(n, sublane, max_cols)
    if cols is None:
        # n not a multiple of 128: pad the flattened array up to a full
        # (sublane, 128) tile multiple, run the normal streamed/tiled path
        # (keeps pipelining and dual-TC sharding), and slice the tail off.
        pad_unit = sublane * 128
        n_pad = ((n + pad_unit - 1) // pad_unit) * pad_unit
        x_flat = jnp.pad(x.reshape(-1), (0, n_pad - n))
        cols = _choose_cols(n_pad, sublane, max_cols)
        rows = n_pad // cols
        x2d = x_flat.reshape(rows, cols)
        n_out = n
    else:
        rows = n // cols
        x2d = x.reshape(rows, cols)
        n_out = None

    tile_rows = _choose_tile_rows(rows, cols, itemsize, sublane, max_tile_bytes)
    grid = (pl.cdiv(rows, tile_rows),)

    cost = pl.CostEstimate(
        flops=2 * rows * cols,
        transcendentals=0,
        bytes_accessed=2 * rows * cols * itemsize,
    )

    compiler_kwargs = dict(dimension_semantics=("parallel",))
    if vmem_limit is not None:
        compiler_kwargs["vmem_limit_bytes"] = vmem_limit

    out = pl.pallas_call(
        _affine_kernel,
        out_shape=jax.ShapeDtypeStruct((rows, cols), dtype),
        grid_spec=pltpu.PrefetchScalarGridSpec(
            num_scalar_prefetch=0,
            grid=grid,
            in_specs=[pl.BlockSpec((tile_rows, cols), lambda i: (i, 0))],
            out_specs=pl.BlockSpec((tile_rows, cols), lambda i: (i, 0)),
        ),
        compiler_params=pltpu.CompilerParams(**compiler_kwargs),
        cost_estimate=cost,
    )(x2d)

    if n_out is not None:
        out = out.reshape(-1)[:n_out]
    return out.reshape(orig_shape)


def _reference(x):
    if not jnp.issubdtype(x.dtype, jnp.floating):
        x = x.astype(jnp.float32)
    return ((x + 5.0) - 2.0) * 3.0 / 4.0


if __name__ == "__main__":
    key = jax.random.PRNGKey(0)
    k1, k2, k3 = jax.random.split(key, 3)

    # Main case: small NCHW-style f32 input (lane-dense, single-block path).
    x1 = jax.random.normal(k1, (2, 4, 16, 16), dtype=jnp.float32)
    y1 = pt_module_forward(x1)
    jax.block_until_ready(y1)
    assert y1.shape == x1.shape and y1.dtype == x1.dtype
    assert jnp.allclose(y1, _reference(x1), atol=1e-5, rtol=1e-5), "mismatch (x1)"

    # Odd-sized tensor (n % 128 != 0): exercises the pad + tiled + slice path.
    x2 = jax.random.normal(k2, (3, 5, 7), dtype=jnp.float32)
    y2 = pt_module_forward(x2)
    jax.block_until_ready(y2)
    assert jnp.allclose(y2, _reference(x2), atol=1e-5, rtol=1e-5), "mismatch (x2)"

    # Multi-step grid with an exact tile divisor (rows=72 -> tile_rows=8, 9 steps).
    x3 = jax.random.normal(k3, (72, 1024), dtype=jnp.float32)
    y3 = pt_module_forward(x3, max_tile_bytes=64 * 1024)
    jax.block_until_ready(y3)
    assert jnp.allclose(y3, _reference(x3), atol=1e-5, rtol=1e-5), "mismatch (x3)"

    # Integer input: PyTorch's div promotes to floating point.
    x4 = jnp.arange(30, dtype=jnp.int32).reshape(5, 6)
    y4 = pt_module_forward(x4)
    jax.block_until_ready(y4)
    assert y4.dtype == jnp.float32
    assert jnp.allclose(y4, _reference(x4), atol=1e-5, rtol=1e-5), "mismatch (x4)"

    print("KERNEL_OK")
</pallas_src>

<mosaic_0001>
module attributes {stable_mosaic.version = 11 : i64} {
  func.func @_affine_kernel(%arg0: i32, %arg1: memref<8x256xf32, #tpu.memory_space<vmem>>, %arg2: memref<8x256xf32, #tpu.memory_space<vmem>>) attributes {dimension_semantics = [#tpu.dimension_semantics<parallel>], iteration_bounds = array<i64: 1>, scalar_prefetch = 0 : i64, scratch_operands = 0 : i64, tpu.core_type = #tpu.core_type<tc>, window_params = [{transform_indices = @transform_0, window_bounds = array<i64: 8, 256>}, {transform_indices = @transform_1, window_bounds = array<i64: 8, 256>}]} {
    %c0 = arith.constant 0 : index
    %c0_0 = arith.constant 0 : index
    %0 = vector.load %arg1[%c0, %c0_0] : memref<8x256xf32, #tpu.memory_space<vmem>>, vector<8x256xf32>
    %cst = arith.constant 3.000000e+00 : f32
    %1 = vector.broadcast %cst : f32 to vector<8x256xf32>
    %2 = arith.addf %0, %1 : vector<8x256xf32>
    %cst_1 = arith.constant 7.500000e-01 : f32
    %3 = vector.broadcast %cst_1 : f32 to vector<8x256xf32>
    %4 = arith.mulf %2, %3 : vector<8x256xf32>
    %c0_2 = arith.constant 0 : index
    %c0_3 = arith.constant 0 : index
    %5 = vector.load %arg2[%c0_2, %c0_3] : memref<8x256xf32, #tpu.memory_space<vmem>>, vector<8x256xf32>
    tpu.vector_store %arg2[%c0_2, %c0_3], %4 {strides = array<i32>} : memref<8x256xf32, #tpu.memory_space<vmem>>, vector<8x256xf32>,
    return
  }
  func.func @transform_0(%arg0: i32) -> (i32, i32) {
    %c0_i32 = arith.constant 0 : i32
    %c0_i32_0 = arith.constant 0 : i32
    return %arg0, %c0_i32 : i32, i32
  }
  func.func @transform_1(%arg0: i32) -> (i32, i32) {
    %c0_i32 = arith.constant 0 : i32
    %c0_i32_0 = arith.constant 0 : i32
    return %arg0, %c0_i32 : i32, i32
  }
}

</mosaic_0001>

<bundles_post_ra>
// kernel: tpu_custom_call.1
= control target key start
LH: loop header
LB: loop body
LE: loop exit
PB: predicated region body
PF: predicated region fallthrough
CT: control target
= control target key end

     0   :  { %6 = vsyncpa [#allocation3], 0  ;;  %s108_s0 = inlined_call_operand.hbm [shape: f32[8,256], index: 0, kind: input, shape index: {}]   ;;  %s109_s1 = inlined_call_operand.hbm [shape: f32[8,256], index: 1, kind: output, shape index: {}]  }
   0x1   :  { %7 = vsyncpa [#allocation4], 0  ;;  %s90_s6 = smov [#allocation2]  }
   0x2   :  { %s14_s7 = sshll.u32 %s90_s6, 4  ;;  %s15_s7 = int_to_ptr.vmem [resolvable:$true] %s14_s7 }
   0x3   :  { %s54_s8 = scalar_lea.vmem %s15_s7, 256  ;;  %p59_p1 = scmp.lt.s32.totalorder %s15_s7, %s15_s7 }
   0x4   :  { %p55_p0 = scmp.ne.s32.totalorder %s15_s7, %s54_s8  ;;  %p60_p2 = scmp.lt.s32.totalorder %s54_s8, %s54_s8 }
   0x6   :  { %p61_p3 = por %p60_p2, %p59_p1 }
   0x8   :  { %p62_p4 = pnand %p61_p3, %p55_p0 }
   0xa   :  { %65 = shalt.err (!%p62_p4)
}
   0xb   :  { %17 = dma.hbm_to_vmem [thread:$0]  %s108_s0, 256, %s15_s7, [#allocation3]  }
   0xc   :  { %86 = dma.done.wait [#allocation3], 256  }
   0xd   :  { %87 = vsyncadd [#allocation3], 4294967040  ;;  %v21_v0 = vld [vmem:[#allocation2] sm:$0xff]  ;;  %v22_v1 = vld [vmem:[#allocation2 + $0x8] sm:$0xff]  ;;  %s91_s11 = smov [#allocation5]  }
   0xe   :  { %s35_s12 = sshll.u32 %s91_s11, 4  ;;  %v23_v2 = vadd.f32 3.0, %v21_v0  ;;  %v24_v3 = vadd.f32 3.0, %v22_v1  ;;  %s36_s12 = int_to_ptr.vmem [resolvable:$true] %s35_s12 }
   0xf   :  { %s66_s13 = scalar_lea.vmem %s36_s12, 256  ;;  %p71_p6 = scmp.lt.s32.totalorder %s36_s12, %s36_s12 }
  0x10   :  { %v25_v4 = vmul.f32 0.75, %v23_v2  ;;  %v26_v5 = vmul.f32 0.75, %v24_v3  ;;  %p67_p5 = scmp.ne.s32.totalorder %s36_s12, %s66_s13  ;;  %p72_p7 = scmp.lt.s32.totalorder %s66_s13, %s66_s13 }
  0x12   :  { %27 = vst [vmem:[#allocation5] sm:$0xff] %v25_v4  ;;  %28 = vst [vmem:[#allocation5 + $0x8] sm:$0xff] %v26_v5  ;;  %p73_p8 = por %p72_p7, %p71_p6 }
  0x14   :  { %p74_p9 = pnand %p73_p8, %p67_p5 }
  0x16   :  { %77 = shalt.err (!%p74_p9)
}
  0x17   :  { %38 = dma.vmem_to_hbm [thread:$0]  %s36_s12, 256, %s109_s1, [#allocation4]  }
  0x18   :  { %88 = dma.done.wait [#allocation4], 256  }
  0x19   :  { %89 = vsyncadd [#allocation4], 4294967040 }
  0x1a   :  { %42 = vsyncpa [#allocation3], 1 }
  0x1b   :  { %43 = vsyncpa [#allocation4], 1 }

</bundles_post_ra>
